<compile_context>
chip_gen: v5e
topology: v5e:2x2
jax: 0.10.0
libtpu: 0.0.40
codegen_flags: <defaults>
</compile_context>

<pallas_src>
import functools

import jax
import jax.numpy as jnp
import numpy as np
from jax.experimental import pallas as pl
from jax.experimental.pallas import tpu as pltpu


# -----------------------------------------------------------------------------
# Fused kernel: conv1 -> conv2 -> GAP -> enc_fc -> dec_fc1 -> dec_fc2 -> dec_fc3
# -----------------------------------------------------------------------------
def _psgn_fused_kernel(xp_ref, r1s_ref, cb1s_ref, b1t_ref,
                       r2s_ref, cb2s_ref, b2t_ref,
                       rg_ref, cgw3_ref, b3_ref,
                       w4_ref, b4_ref, w5_ref, b5_ref, w6_ref, b6_ref,
                       out_ref):
    f32 = jnp.float32
    bf16 = jnp.bfloat16

    x = xp_ref[...]                                   # (B*Hp, Wp*Cin), bf16

    # ---- encoder conv1: 3x3, stride 2, pad 1 --------------------------------
    # One stacked row-selection dot, then 3 kw-folded tap dots.  Tap-LHS slices
    # start at multiples of the sublane tile (8), so they are free views; the
    # slice values are exact copies of bf16 inputs, so the bf16 cast is lossless.
    m1 = r1s_ref.shape[0] // 3                        # B*Ho1
    n1 = cb1s_ref.shape[2]                            # Wo1*C1
    rows1 = jnp.dot(r1s_ref[...], x, preferred_element_type=f32)   # (3*m1, Wp*Cin)
    h1 = jnp.broadcast_to(b1t_ref[...], (m1, n1))     # bias-initialised accumulator
    for kh in range(3):
        h1 = h1 + jnp.dot(rows1[kh * m1:(kh + 1) * m1].astype(bf16),
                          cb1s_ref[kh], preferred_element_type=f32)
    h1 = jnp.maximum(h1, 0.0)

    # ---- encoder conv2: 3x3, stride 2, pad 1 --------------------------------
    # Zero rows in r2s / skipped blocks in cb2s encode the 'same' zero padding.
    m2 = r2s_ref.shape[0] // 3                        # B*Ho2
    n2 = cb2s_ref.shape[2]                            # Wo2*C2
    rows2 = jnp.dot(r2s_ref[...], h1.astype(bf16), preferred_element_type=f32)
    h2 = jnp.broadcast_to(b2t_ref[...], (m2, n2))
    for kh in range(3):
        h2 = h2 + jnp.dot(rows2[kh * m2:(kh + 1) * m2].astype(bf16),
                          cb2s_ref[kh], preferred_element_type=f32)
    h2 = jnp.maximum(h2, 0.0)

    # ---- global average pool (MXU) + encoder fc ------------------------------
    # rg averages over the row-spatial axis; the column-spatial average is
    # folded into cgw3 = Cg @ enc_fc_w at weight-prep time.
    pooled = jnp.dot(rg_ref[...], h2.astype(bf16), preferred_element_type=f32)
    c = jnp.dot(pooled.astype(bf16), cgw3_ref[...],
                preferred_element_type=f32) + b3_ref[...]

    # ---- decoder: 3 chained fcs, all resident --------------------------------
    d = jnp.maximum(jnp.dot(c.astype(bf16), w4_ref[...],
                            preferred_element_type=f32) + b4_ref[...], 0.0)
    d = jnp.maximum(jnp.dot(d.astype(bf16), w5_ref[...],
                            preferred_element_type=f32) + b5_ref[...], 0.0)
    out = jnp.dot(d.astype(bf16), w6_ref[...],
                  preferred_element_type=f32) + b6_ref[...]

    out_ref[...] = out.astype(out_ref.dtype)


# -----------------------------------------------------------------------------
# Parameter init + one-time kernel-operand preparation (host-side, per weights)
# -----------------------------------------------------------------------------
def init_psgn_params(key, *, in_ch=3, c_dim=32, hidden=128, n_points=64):
    ks = jax.random.split(key, 12)

    def w(k, shape, fan_in):
        return (jax.random.normal(k, shape, jnp.float32)
                / jnp.sqrt(fan_in)).astype(jnp.float32)

    def b(k, n):
        return (0.1 * jax.random.normal(k, (n,), jnp.float32)).astype(jnp.float32)

    params = {
        # encoder: conv1 (in_ch->8), conv2 (8->16), fc (16->c_dim)
        "conv1_w": w(ks[0], (3, 3, in_ch, 8), 3 * 3 * in_ch),
        "conv1_b": b(ks[6], 8),
        "conv2_w": w(ks[1], (3, 3, 8, 16), 3 * 3 * 8),
        "conv2_b": b(ks[7], 16),
        "enc_fc_w": w(ks[2], (16, c_dim), 16),
        "enc_fc_b": b(ks[8], c_dim),
        # decoder: fc1 (c_dim->hidden), fc2 (hidden->hidden), fc3 (hidden->3*n_points)
        "dec_fc1_w": w(ks[3], (c_dim, hidden), c_dim),
        "dec_fc1_b": b(ks[9], hidden),
        "dec_fc2_w": w(ks[4], (hidden, hidden), hidden),
        "dec_fc2_b": b(ks[10], hidden),
        "dec_fc3_w": w(ks[5], (hidden, 3 * n_points), hidden),
        "dec_fc3_b": b(ks[11], 3 * n_points),
    }
    return params, n_points


def prepare_kernel_operands(params, *, batch, height=16, width=16):
    """Build the stacked selection matrices + kw-folded weight layouts the fused
    kernel consumes.  Runs once per parameter set, host-side (numpy)."""
    w1 = np.asarray(params["conv1_w"], np.float32)    # (3,3,Cin,C1)
    w2 = np.asarray(params["conv2_w"], np.float32)    # (3,3,C1,C2)
    in_ch, c1 = w1.shape[2], w1.shape[3]
    c2 = w2.shape[3]

    B = batch
    Hp, Wp = height + 2, width + 2                    # padded image
    Ho1, Wo1 = height // 2, width // 2                # conv1 output spatial
    Ho2, Wo2 = Ho1 // 2, Wo1 // 2                     # conv2 output spatial

    # conv1 stacked row selection: block kh picks padded-image row 2*ho+kh.
    r1s = np.zeros((3 * B * Ho1, B * Hp), np.float32)
    for kh in range(3):
        for b in range(B):
            for ho in range(Ho1):
                r1s[kh * B * Ho1 + b * Ho1 + ho, b * Hp + 2 * ho + kh] = 1.0

    # conv1 kw-folded column selection with tap weights:
    #   cb1s[kh][(x,cin),(wo,co)] = sum_kw [x == 2*wo+kw] * W1[kh,kw,cin,co]
    cb1s = np.zeros((3, Wp * in_ch, Wo1 * c1), np.float32)
    for kh in range(3):
        for kw in range(3):
            for wo in range(Wo1):
                xcol = 2 * wo + kw
                cb1s[kh, xcol * in_ch:(xcol + 1) * in_ch,
                     wo * c1:(wo + 1) * c1] += w1[kh, kw]

    # conv2 stacked row selection (zero rows encode the 'same' zero padding).
    r2s = np.zeros((3 * B * Ho2, B * Ho1), np.float32)
    for kh in range(3):
        for b in range(B):
            for u in range(Ho2):
                y = 2 * u + kh - 1
                if 0 <= y < Ho1:
                    r2s[kh * B * Ho2 + b * Ho2 + u, b * Ho1 + y] = 1.0

    # conv2 kw-folded column selection with tap weights.
    cb2s = np.zeros((3, Wo1 * c1, Wo2 * c2), np.float32)
    for kh in range(3):
        for kw in range(3):
            for v in range(Wo2):
                xcol = 2 * v + kw - 1
                if 0 <= xcol < Wo1:
                    cb2s[kh, xcol * c1:(xcol + 1) * c1,
                         v * c2:(v + 1) * c2] += w2[kh, kw]

    # GAP: row-average matrix (1/(Ho2*Wo2) folded in; exact power of two) ...
    rg = np.zeros((B, B * Ho2), np.float32)
    for b in range(B):
        rg[b, b * Ho2:(b + 1) * Ho2] = 1.0 / float(Ho2 * Wo2)
    # ... and the column-average selection folded into the encoder fc weight.
    cg = np.zeros((Wo2 * c2, c2), np.float32)
    for v in range(Wo2):
        cg[v * c2:(v + 1) * c2, :] = np.eye(c2, dtype=np.float32)
    cgw3 = cg @ np.asarray(params["enc_fc_w"], np.float32)    # (Wo2*C2, c_dim)

    # conv biases tiled to the lane-dense (wo, c) column layout (kept f32).
    b1t = np.tile(np.asarray(params["conv1_b"]), Wo1).reshape(1, Wo1 * c1)
    b2t = np.tile(np.asarray(params["conv2_b"]), Wo2).reshape(1, Wo2 * c2)

    bf16 = jnp.bfloat16
    f32 = jnp.float32
    return {
        # large / matmul operands -> bf16 (halves DMA bytes, native MXU path).
        # selection matrices only hold {0, 1, 1/16}: bf16 is lossless for them.
        "r1s": jnp.asarray(r1s, bf16), "cb1s": jnp.asarray(cb1s, bf16),
        "r2s": jnp.asarray(r2s, bf16), "cb2s": jnp.asarray(cb2s, bf16),
        "rg": jnp.asarray(rg, bf16), "cgw3": jnp.asarray(cgw3, bf16),
        "w4": jnp.asarray(params["dec_fc1_w"], bf16),
        "w5": jnp.asarray(params["dec_fc2_w"], bf16),
        "w6": jnp.asarray(params["dec_fc3_w"], bf16),
        # bias operands stay f32 (added into the f32 accumulators on the VPU).
        "b1t": jnp.asarray(b1t, f32),
        "b2t": jnp.asarray(b2t, f32),
        "b3": jnp.asarray(params["enc_fc_b"], f32).reshape(1, -1),
        "b4": jnp.asarray(params["dec_fc1_b"], f32).reshape(1, -1),
        "b5": jnp.asarray(params["dec_fc2_b"], f32).reshape(1, -1),
        "b6": jnp.asarray(params["dec_fc3_b"], f32).reshape(1, -1),
    }


# -----------------------------------------------------------------------------
# Fused forward (single pallas_call)
# -----------------------------------------------------------------------------
def _full_spec(shape):
    rank = len(shape)
    return pl.BlockSpec(tuple(shape), lambda i, _r=rank: (0,) * _r)


def _flops_estimate(operands, batch):
    r1s, cb1s = operands["r1s"], operands["cb1s"]
    r2s, cb2s = operands["r2s"], operands["cb2s"]
    rg, cgw3 = operands["rg"], operands["cgw3"]
    w4, w5, w6 = operands["w4"], operands["w5"], operands["w6"]
    f = 0
    f += 2 * r1s.shape[0] * r1s.shape[1] * cb1s.shape[1]              # conv1 row-select
    f += 3 * 2 * (r1s.shape[0] // 3) * cb1s.shape[1] * cb1s.shape[2]  # conv1 taps
    f += 2 * r2s.shape[0] * r2s.shape[1] * cb1s.shape[2]              # conv2 row-select
    f += 3 * 2 * (r2s.shape[0] // 3) * cb2s.shape[1] * cb2s.shape[2]  # conv2 taps
    f += 2 * rg.shape[0] * rg.shape[1] * cb2s.shape[2]                # GAP (row part)
    f += 2 * batch * cgw3.shape[0] * cgw3.shape[1]                    # enc fc
    f += 2 * batch * w4.shape[0] * w4.shape[1]                        # dec fc1
    f += 2 * batch * w5.shape[0] * w5.shape[1]                        # dec fc2
    f += 2 * batch * w6.shape[0] * w6.shape[1]                        # dec fc3
    return int(f)


def psgn_forward(operands, x_nchw, *, n_points):
    """PSGN.forward: c = encoder(x); points = decoder(c) — one fused kernel."""
    B, Cin, H, W = x_nchw.shape
    # Host-side layout plumbing only: NCHW -> NHWC, 'same' pad, 2-D bf16 slab.
    x = jnp.transpose(x_nchw, (0, 2, 3, 1)).astype(jnp.float32)
    xp = jnp.pad(x, ((0, 0), (1, 1), (1, 1), (0, 0)))
    xp2d = xp.reshape(B * (H + 2), (W + 2) * Cin).astype(jnp.bfloat16)

    names = ("r1s", "cb1s", "b1t", "r2s", "cb2s", "b2t", "rg", "cgw3",
             "b3", "w4", "b4", "w5", "b5", "w6", "b6")
    ops = [xp2d] + [operands[k] for k in names]
    out_cols = operands["b6"].shape[1]                # 3 * n_points

    flops = _flops_estimate(operands, B)
    bytes_accessed = sum(int(np.prod(a.shape)) * a.dtype.itemsize for a in ops)
    bytes_accessed += 4 * B * out_cols

    # TODO(synk): for streaming workloads, replace grid=(1,) with a leading
    # "parallel" axis over input tiles and constant index_maps for all weight
    # operands so weights stay VMEM-resident and v7x's two TCs are both used.
    out = pl.pallas_call(
        _psgn_fused_kernel,
        out_shape=jax.ShapeDtypeStruct((B, out_cols), jnp.float32),
        grid=(1,),
        in_specs=[_full_spec(a.shape) for a in ops],
        out_specs=_full_spec((B, out_cols)),
        compiler_params=pltpu.CompilerParams(
            dimension_semantics=("arbitrary",)),
        cost_estimate=pl.CostEstimate(flops=flops, transcendentals=0,
                                      bytes_accessed=bytes_accessed),
    )(*ops)

    return out.reshape(B, n_points, 3)


# -----------------------------------------------------------------------------
# Pure-JAX reference of the same network (for in-script validation, all f32)
# -----------------------------------------------------------------------------
def psgn_reference(params, x_nchw, n_points):
    dn = ("NHWC", "HWIO", "NHWC")
    x = jnp.transpose(x_nchw, (0, 2, 3, 1)).astype(jnp.float32)
    h = jax.lax.conv_general_dilated(x, params["conv1_w"], (2, 2),
                                     ((1, 1), (1, 1)), dimension_numbers=dn)
    h = jnp.maximum(h + params["conv1_b"], 0.0)
    h = jax.lax.conv_general_dilated(h, params["conv2_w"], (2, 2),
                                     ((1, 1), (1, 1)), dimension_numbers=dn)
    h = jnp.maximum(h + params["conv2_b"], 0.0)
    h = jnp.mean(h, axis=(1, 2))
    c = h @ params["enc_fc_w"] + params["enc_fc_b"]
    d = jnp.maximum(c @ params["dec_fc1_w"] + params["dec_fc1_b"], 0.0)
    d = jnp.maximum(d @ params["dec_fc2_w"] + params["dec_fc2_b"], 0.0)
    out = d @ params["dec_fc3_w"] + params["dec_fc3_b"]
    return out.reshape(x.shape[0], n_points, 3)


# -----------------------------------------------------------------------------
if __name__ == "__main__":
    key = jax.random.PRNGKey(0)
    k_param, k_input = jax.random.split(key)

    params, n_points = init_psgn_params(k_param, in_ch=3, c_dim=32,
                                        hidden=128, n_points=64)

    # Small deterministic image batch, NCHW like the PyTorch module expects.
    x = jax.random.normal(k_input, (2, 3, 16, 16), dtype=jnp.float32)

    # One-time weight preprocessing for the fused kernel.
    operands = prepare_kernel_operands(params, batch=x.shape[0],
                                       height=16, width=16)

    fwd = jax.jit(functools.partial(psgn_forward, n_points=n_points))
    points = fwd(operands, x)
    jax.block_until_ready(points)

    assert points.shape == (2, n_points, 3), points.shape
    assert points.dtype == jnp.float32
    assert bool(jnp.all(jnp.isfinite(points)))

    # Validate the fused bf16 kernel against the pure-XLA f32 reference.
    ref = psgn_reference(params, x, n_points)
    np.testing.assert_allclose(np.asarray(points), np.asarray(ref),
                               rtol=2e-2, atol=2e-2)

    print("KERNEL_OK")
</pallas_src>

<mosaic_0001>
module attributes {stable_mosaic.version = 11 : i64} {
  func.func @_psgn_fused_kernel(%arg0: i32, %arg1: memref<36x54xbf16, #tpu.memory_space<vmem>>, %arg2: memref<48x36xbf16, #tpu.memory_space<vmem>>, %arg3: memref<3x54x64xbf16, #tpu.memory_space<vmem>>, %arg4: memref<1x64xf32, #tpu.memory_space<vmem>>, %arg5: memref<24x16xbf16, #tpu.memory_space<vmem>>, %arg6: memref<3x64x64xbf16, #tpu.memory_space<vmem>>, %arg7: memref<1x64xf32, #tpu.memory_space<vmem>>, %arg8: memref<2x8xbf16, #tpu.memory_space<vmem>>, %arg9: memref<64x32xbf16, #tpu.memory_space<vmem>>, %arg10: memref<1x32xf32, #tpu.memory_space<vmem>>, %arg11: memref<32x128xbf16, #tpu.memory_space<vmem>>, %arg12: memref<1x128xf32, #tpu.memory_space<vmem>>, %arg13: memref<128x128xbf16, #tpu.memory_space<vmem>>, %arg14: memref<1x128xf32, #tpu.memory_space<vmem>>, %arg15: memref<128x192xbf16, #tpu.memory_space<vmem>>, %arg16: memref<1x192xf32, #tpu.memory_space<vmem>>, %arg17: memref<2x192xf32, #tpu.memory_space<vmem>>) attributes {dimension_semantics = [#tpu.dimension_semantics<arbitrary>], iteration_bounds = array<i64: 1>, scalar_prefetch = 0 : i64, scratch_operands = 0 : i64, tpu.core_type = #tpu.core_type<tc>, window_params = [{pipeline_mode = #tpu.pipeline_mode<synchronous>, transform_indices = @transform_0, window_bounds = array<i64: 36, 54>}, {pipeline_mode = #tpu.pipeline_mode<synchronous>, transform_indices = @transform_1, window_bounds = array<i64: 48, 36>}, {pipeline_mode = #tpu.pipeline_mode<synchronous>, transform_indices = @transform_2, window_bounds = array<i64: 3, 54, 64>}, {pipeline_mode = #tpu.pipeline_mode<synchronous>, transform_indices = @transform_3, window_bounds = array<i64: 1, 64>}, {pipeline_mode = #tpu.pipeline_mode<synchronous>, transform_indices = @transform_4, window_bounds = array<i64: 24, 16>}, {pipeline_mode = #tpu.pipeline_mode<synchronous>, transform_indices = @transform_5, window_bounds = array<i64: 3, 64, 64>}, {pipeline_mode = #tpu.pipeline_mode<synchronous>, transform_indices = @transform_6, window_bounds = array<i64: 1, 64>}, {pipeline_mode = #tpu.pipeline_mode<synchronous>, transform_indices = @transform_7, window_bounds = array<i64: 2, 8>}, {pipeline_mode = #tpu.pipeline_mode<synchronous>, transform_indices = @transform_8, window_bounds = array<i64: 64, 32>}, {pipeline_mode = #tpu.pipeline_mode<synchronous>, transform_indices = @transform_9, window_bounds = array<i64: 1, 32>}, {pipeline_mode = #tpu.pipeline_mode<synchronous>, transform_indices = @transform_10, window_bounds = array<i64: 32, 128>}, {pipeline_mode = #tpu.pipeline_mode<synchronous>, transform_indices = @transform_11, window_bounds = array<i64: 1, 128>}, {pipeline_mode = #tpu.pipeline_mode<synchronous>, transform_indices = @transform_12, window_bounds = array<i64: 128, 128>}, {pipeline_mode = #tpu.pipeline_mode<synchronous>, transform_indices = @transform_13, window_bounds = array<i64: 1, 128>}, {pipeline_mode = #tpu.pipeline_mode<synchronous>, transform_indices = @transform_14, window_bounds = array<i64: 128, 192>}, {pipeline_mode = #tpu.pipeline_mode<synchronous>, transform_indices = @transform_15, window_bounds = array<i64: 1, 192>}, {pipeline_mode = #tpu.pipeline_mode<synchronous>, transform_indices = @transform_16, window_bounds = array<i64: 2, 192>}]} {
    %c0 = arith.constant 0 : index
    %c0_0 = arith.constant 0 : index
    %0 = vector.load %arg1[%c0, %c0_0] : memref<36x54xbf16, #tpu.memory_space<vmem>>, vector<36x54xbf16>
    %c0_1 = arith.constant 0 : index
    %c0_2 = arith.constant 0 : index
    %1 = vector.load %arg2[%c0_1, %c0_2] : memref<48x36xbf16, #tpu.memory_space<vmem>>, vector<48x36xbf16>
    %cst = arith.constant dense<0.000000e+00> : vector<48x54xf32>
    %2 = tpu.matmul %1, %0, %cst {dimension_numbers = #tpu.dot_dimension_numbers<[1], [0], [0], [1], [0, 0, 1, 1], [], []>} : vector<48x36xbf16>, vector<36x54xbf16>, vector<48x54xf32> -> vector<48x54xf32>
    %c0_3 = arith.constant 0 : index
    %c0_4 = arith.constant 0 : index
    %3 = vector.load %arg4[%c0_3, %c0_4] : memref<1x64xf32, #tpu.memory_space<vmem>>, vector<1x64xf32>
    %4 = vector.shape_cast %3 : vector<1x64xf32> to vector<1x64xf32>
    %5 = vector.broadcast %4 : vector<1x64xf32> to vector<16x64xf32>
    %6 = vector.extract_strided_slice %2 {offsets = [0, 0], sizes = [16, 54], strides = [1, 1]} : vector<48x54xf32> to vector<16x54xf32>
    %7 = arith.truncf %6 : vector<16x54xf32> to vector<16x54xbf16>
    %c0_5 = arith.constant 0 : index
    %c0_6 = arith.constant 0 : index
    %c0_7 = arith.constant 0 : index
    %8 = vector.load %arg3[%c0_5, %c0_6, %c0_7] : memref<3x54x64xbf16, #tpu.memory_space<vmem>>, vector<1x54x64xbf16>
    %9 = vector.shape_cast %8 : vector<1x54x64xbf16> to vector<54x64xbf16>
    %cst_8 = arith.constant dense<0.000000e+00> : vector<16x64xf32>
    %10 = tpu.matmul %7, %9, %cst_8 {dimension_numbers = #tpu.dot_dimension_numbers<[1], [0], [0], [1], [0, 0, 1, 1], [], []>} : vector<16x54xbf16>, vector<54x64xbf16>, vector<16x64xf32> -> vector<16x64xf32>
    %11 = arith.addf %5, %10 : vector<16x64xf32>
    %12 = vector.extract_strided_slice %2 {offsets = [16, 0], sizes = [16, 54], strides = [1, 1]} : vector<48x54xf32> to vector<16x54xf32>
    %13 = arith.truncf %12 : vector<16x54xf32> to vector<16x54xbf16>
    %c1 = arith.constant 1 : index
    %c0_9 = arith.constant 0 : index
    %c0_10 = arith.constant 0 : index
    %14 = vector.load %arg3[%c1, %c0_9, %c0_10] : memref<3x54x64xbf16, #tpu.memory_space<vmem>>, vector<1x54x64xbf16>
    %15 = vector.shape_cast %14 : vector<1x54x64xbf16> to vector<54x64xbf16>
    %cst_11 = arith.constant dense<0.000000e+00> : vector<16x64xf32>
    %16 = tpu.matmul %13, %15, %cst_11 {dimension_numbers = #tpu.dot_dimension_numbers<[1], [0], [0], [1], [0, 0, 1, 1], [], []>} : vector<16x54xbf16>, vector<54x64xbf16>, vector<16x64xf32> -> vector<16x64xf32>
    %17 = arith.addf %11, %16 : vector<16x64xf32>
    %18 = vector.extract_strided_slice %2 {offsets = [32, 0], sizes = [16, 54], strides = [1, 1]} : vector<48x54xf32> to vector<16x54xf32>
    %19 = arith.truncf %18 : vector<16x54xf32> to vector<16x54xbf16>
    %c2 = arith.constant 2 : index
    %c0_12 = arith.constant 0 : index
    %c0_13 = arith.constant 0 : index
    %20 = vector.load %arg3[%c2, %c0_12, %c0_13] : memref<3x54x64xbf16, #tpu.memory_space<vmem>>, vector<1x54x64xbf16>
    %21 = vector.shape_cast %20 : vector<1x54x64xbf16> to vector<54x64xbf16>
    %cst_14 = arith.constant dense<0.000000e+00> : vector<16x64xf32>
    %22 = tpu.matmul %19, %21, %cst_14 {dimension_numbers = #tpu.dot_dimension_numbers<[1], [0], [0], [1], [0, 0, 1, 1], [], []>} : vector<16x54xbf16>, vector<54x64xbf16>, vector<16x64xf32> -> vector<16x64xf32>
    %23 = arith.addf %17, %22 : vector<16x64xf32>
    %cst_15 = arith.constant 0.000000e+00 : f32
    %24 = vector.broadcast %cst_15 : f32 to vector<16x64xf32>
    %25 = arith.maximumf %23, %24 : vector<16x64xf32>
    %c0_16 = arith.constant 0 : index
    %c0_17 = arith.constant 0 : index
    %26 = vector.load %arg5[%c0_16, %c0_17] : memref<24x16xbf16, #tpu.memory_space<vmem>>, vector<24x16xbf16>
    %27 = arith.truncf %25 : vector<16x64xf32> to vector<16x64xbf16>
    %cst_18 = arith.constant dense<0.000000e+00> : vector<24x64xf32>
    %28 = tpu.matmul %26, %27, %cst_18 {dimension_numbers = #tpu.dot_dimension_numbers<[1], [0], [0], [1], [0, 0, 1, 1], [], []>} : vector<24x16xbf16>, vector<16x64xbf16>, vector<24x64xf32> -> vector<24x64xf32>
    %c0_19 = arith.constant 0 : index
    %c0_20 = arith.constant 0 : index
    %29 = vector.load %arg7[%c0_19, %c0_20] : memref<1x64xf32, #tpu.memory_space<vmem>>, vector<1x64xf32>
    %30 = vector.shape_cast %29 : vector<1x64xf32> to vector<1x64xf32>
    %31 = vector.broadcast %30 : vector<1x64xf32> to vector<8x64xf32>
    %32 = vector.extract_strided_slice %28 {offsets = [0, 0], sizes = [8, 64], strides = [1, 1]} : vector<24x64xf32> to vector<8x64xf32>
    %33 = arith.truncf %32 : vector<8x64xf32> to vector<8x64xbf16>
    %c0_21 = arith.constant 0 : index
    %c0_22 = arith.constant 0 : index
    %c0_23 = arith.constant 0 : index
    %34 = vector.load %arg6[%c0_21, %c0_22, %c0_23] : memref<3x64x64xbf16, #tpu.memory_space<vmem>>, vector<1x64x64xbf16>
    %35 = vector.shape_cast %34 : vector<1x64x64xbf16> to vector<64x64xbf16>
    %cst_24 = arith.constant dense<0.000000e+00> : vector<8x64xf32>
    %36 = tpu.matmul %33, %35, %cst_24 {dimension_numbers = #tpu.dot_dimension_numbers<[1], [0], [0], [1], [0, 0, 1, 1], [], []>} : vector<8x64xbf16>, vector<64x64xbf16>, vector<8x64xf32> -> vector<8x64xf32>
    %37 = arith.addf %31, %36 : vector<8x64xf32>
    %38 = vector.extract_strided_slice %28 {offsets = [8, 0], sizes = [8, 64], strides = [1, 1]} : vector<24x64xf32> to vector<8x64xf32>
    %39 = arith.truncf %38 : vector<8x64xf32> to vector<8x64xbf16>
    %c1_25 = arith.constant 1 : index
    %c0_26 = arith.constant 0 : index
    %c0_27 = arith.constant 0 : index
    %40 = vector.load %arg6[%c1_25, %c0_26, %c0_27] : memref<3x64x64xbf16, #tpu.memory_space<vmem>>, vector<1x64x64xbf16>
    %41 = vector.shape_cast %40 : vector<1x64x64xbf16> to vector<64x64xbf16>
    %cst_28 = arith.constant dense<0.000000e+00> : vector<8x64xf32>
    %42 = tpu.matmul %39, %41, %cst_28 {dimension_numbers = #tpu.dot_dimension_numbers<[1], [0], [0], [1], [0, 0, 1, 1], [], []>} : vector<8x64xbf16>, vector<64x64xbf16>, vector<8x64xf32> -> vector<8x64xf32>
    %43 = arith.addf %37, %42 : vector<8x64xf32>
    %44 = vector.extract_strided_slice %28 {offsets = [16, 0], sizes = [8, 64], strides = [1, 1]} : vector<24x64xf32> to vector<8x64xf32>
    %45 = arith.truncf %44 : vector<8x64xf32> to vector<8x64xbf16>
    %c2_29 = arith.constant 2 : index
    %c0_30 = arith.constant 0 : index
    %c0_31 = arith.constant 0 : index
    %46 = vector.load %arg6[%c2_29, %c0_30, %c0_31] : memref<3x64x64xbf16, #tpu.memory_space<vmem>>, vector<1x64x64xbf16>
    %47 = vector.shape_cast %46 : vector<1x64x64xbf16> to vector<64x64xbf16>
    %cst_32 = arith.constant dense<0.000000e+00> : vector<8x64xf32>
    %48 = tpu.matmul %45, %47, %cst_32 {dimension_numbers = #tpu.dot_dimension_numbers<[1], [0], [0], [1], [0, 0, 1, 1], [], []>} : vector<8x64xbf16>, vector<64x64xbf16>, vector<8x64xf32> -> vector<8x64xf32>
    %49 = arith.addf %43, %48 : vector<8x64xf32>
    %cst_33 = arith.constant 0.000000e+00 : f32
    %50 = vector.broadcast %cst_33 : f32 to vector<8x64xf32>
    %51 = arith.maximumf %49, %50 : vector<8x64xf32>
    %c0_34 = arith.constant 0 : index
    %c0_35 = arith.constant 0 : index
    %52 = vector.load %arg8[%c0_34, %c0_35] : memref<2x8xbf16, #tpu.memory_space<vmem>>, vector<2x8xbf16>
    %53 = arith.truncf %51 : vector<8x64xf32> to vector<8x64xbf16>
    %cst_36 = arith.constant dense<0.000000e+00> : vector<2x64xf32>
    %54 = tpu.matmul %52, %53, %cst_36 {dimension_numbers = #tpu.dot_dimension_numbers<[1], [0], [0], [1], [0, 0, 1, 1], [], []>} : vector<2x8xbf16>, vector<8x64xbf16>, vector<2x64xf32> -> vector<2x64xf32>
    %55 = arith.truncf %54 : vector<2x64xf32> to vector<2x64xbf16>
    %c0_37 = arith.constant 0 : index
    %c0_38 = arith.constant 0 : index
    %56 = vector.load %arg9[%c0_37, %c0_38] : memref<64x32xbf16, #tpu.memory_space<vmem>>, vector<64x32xbf16>
    %cst_39 = arith.constant dense<0.000000e+00> : vector<2x32xf32>
    %57 = tpu.matmul %55, %56, %cst_39 {dimension_numbers = #tpu.dot_dimension_numbers<[1], [0], [0], [1], [0, 0, 1, 1], [], []>} : vector<2x64xbf16>, vector<64x32xbf16>, vector<2x32xf32> -> vector<2x32xf32>
    %c0_40 = arith.constant 0 : index
    %c0_41 = arith.constant 0 : index
    %58 = vector.load %arg10[%c0_40, %c0_41] : memref<1x32xf32, #tpu.memory_space<vmem>>, vector<1x32xf32>
    %59 = vector.broadcast %58 : vector<1x32xf32> to vector<2x32xf32>
    %60 = arith.addf %57, %59 : vector<2x32xf32>
    %61 = arith.truncf %60 : vector<2x32xf32> to vector<2x32xbf16>
    %c0_42 = arith.constant 0 : index
    %c0_43 = arith.constant 0 : index
    %62 = vector.load %arg11[%c0_42, %c0_43] : memref<32x128xbf16, #tpu.memory_space<vmem>>, vector<32x128xbf16>
    %cst_44 = arith.constant dense<0.000000e+00> : vector<2x128xf32>
    %63 = tpu.matmul %61, %62, %cst_44 {dimension_numbers = #tpu.dot_dimension_numbers<[1], [0], [0], [1], [0, 0, 1, 1], [], []>} : vector<2x32xbf16>, vector<32x128xbf16>, vector<2x128xf32> -> vector<2x128xf32>
    %c0_45 = arith.constant 0 : index
    %c0_46 = arith.constant 0 : index
    %64 = vector.load %arg12[%c0_45, %c0_46] : memref<1x128xf32, #tpu.memory_space<vmem>>, vector<1x128xf32>
    %65 = vector.broadcast %64 : vector<1x128xf32> to vector<2x128xf32>
    %66 = arith.addf %63, %65 : vector<2x128xf32>
    %cst_47 = arith.constant 0.000000e+00 : f32
    %67 = vector.broadcast %cst_47 : f32 to vector<2x128xf32>
    %68 = arith.maximumf %66, %67 : vector<2x128xf32>
    %69 = arith.truncf %68 : vector<2x128xf32> to vector<2x128xbf16>
    %c0_48 = arith.constant 0 : index
    %c0_49 = arith.constant 0 : index
    %70 = vector.load %arg13[%c0_48, %c0_49] : memref<128x128xbf16, #tpu.memory_space<vmem>>, vector<128x128xbf16>
    %cst_50 = arith.constant dense<0.000000e+00> : vector<2x128xf32>
    %71 = tpu.matmul %69, %70, %cst_50 {dimension_numbers = #tpu.dot_dimension_numbers<[1], [0], [0], [1], [0, 0, 1, 1], [], []>} : vector<2x128xbf16>, vector<128x128xbf16>, vector<2x128xf32> -> vector<2x128xf32>
    %c0_51 = arith.constant 0 : index
    %c0_52 = arith.constant 0 : index
    %72 = vector.load %arg14[%c0_51, %c0_52] : memref<1x128xf32, #tpu.memory_space<vmem>>, vector<1x128xf32>
    %73 = vector.broadcast %72 : vector<1x128xf32> to vector<2x128xf32>
    %74 = arith.addf %71, %73 : vector<2x128xf32>
    %cst_53 = arith.constant 0.000000e+00 : f32
    %75 = vector.broadcast %cst_53 : f32 to vector<2x128xf32>
    %76 = arith.maximumf %74, %75 : vector<2x128xf32>
    %77 = arith.truncf %76 : vector<2x128xf32> to vector<2x128xbf16>
    %c0_54 = arith.constant 0 : index
    %c0_55 = arith.constant 0 : index
    %78 = vector.load %arg15[%c0_54, %c0_55] : memref<128x192xbf16, #tpu.memory_space<vmem>>, vector<128x192xbf16>
    %cst_56 = arith.constant dense<0.000000e+00> : vector<2x192xf32>
    %79 = tpu.matmul %77, %78, %cst_56 {dimension_numbers = #tpu.dot_dimension_numbers<[1], [0], [0], [1], [0, 0, 1, 1], [], []>} : vector<2x128xbf16>, vector<128x192xbf16>, vector<2x192xf32> -> vector<2x192xf32>
    %c0_57 = arith.constant 0 : index
    %c0_58 = arith.constant 0 : index
    %80 = vector.load %arg16[%c0_57, %c0_58] : memref<1x192xf32, #tpu.memory_space<vmem>>, vector<1x192xf32>
    %81 = vector.broadcast %80 : vector<1x192xf32> to vector<2x192xf32>
    %82 = arith.addf %79, %81 : vector<2x192xf32>
    %c0_59 = arith.constant 0 : index
    %c0_60 = arith.constant 0 : index
    %83 = vector.load %arg17[%c0_59, %c0_60] : memref<2x192xf32, #tpu.memory_space<vmem>>, vector<2x192xf32>
    tpu.vector_store %arg17[%c0_59, %c0_60], %82 {strides = array<i32>} : memref<2x192xf32, #tpu.memory_space<vmem>>, vector<2x192xf32>,
    return
  }
  func.func @transform_0(%arg0: i32) -> (i32, i32) {
    %c0_i32 = arith.constant 0 : i32
    %c0_i32_0 = arith.constant 0 : i32
    %c0_i32_1 = arith.constant 0 : i32
    return %c0_i32, %c0_i32_0 : i32, i32
  }
  func.func @transform_1(%arg0: i32) -> (i32, i32) {
    %c0_i32 = arith.constant 0 : i32
    %c0_i32_0 = arith.constant 0 : i32
    %c0_i32_1 = arith.constant 0 : i32
    return %c0_i32, %c0_i32_0 : i32, i32
  }
  func.func @transform_2(%arg0: i32) -> (i32, i32, i32) {
    %c0_i32 = arith.constant 0 : i32
    %c0_i32_0 = arith.constant 0 : i32
    %c0_i32_1 = arith.constant 0 : i32
    %c0_i32_2 = arith.constant 0 : i32
    return %c0_i32, %c0_i32_0, %c0_i32_1 : i32, i32, i32
  }
  func.func @transform_3(%arg0: i32) -> (i32, i32) {
    %c0_i32 = arith.constant 0 : i32
    %c0_i32_0 = arith.constant 0 : i32
    %c0_i32_1 = arith.constant 0 : i32
    return %c0_i32, %c0_i32_0 : i32, i32
  }
  func.func @transform_4(%arg0: i32) -> (i32, i32) {
    %c0_i32 = arith.constant 0 : i32
    %c0_i32_0 = arith.constant 0 : i32
    %c0_i32_1 = arith.constant 0 : i32
    return %c0_i32, %c0_i32_0 : i32, i32
  }
  func.func @transform_5(%arg0: i32) -> (i32, i32, i32) {
    %c0_i32 = arith.constant 0 : i32
    %c0_i32_0 = arith.constant 0 : i32
    %c0_i32_1 = arith.constant 0 : i32
    %c0_i32_2 = arith.constant 0 : i32
    return %c0_i32, %c0_i32_0, %c0_i32_1 : i32, i32, i32
  }
  func.func @transform_6(%arg0: i32) -> (i32, i32) {
    %c0_i32 = arith.constant 0 : i32
    %c0_i32_0 = arith.constant 0 : i32
    %c0_i32_1 = arith.constant 0 : i32
    return %c0_i32, %c0_i32_0 : i32, i32
  }
  func.func @transform_7(%arg0: i32) -> (i32, i32) {
    %c0_i32 = arith.constant 0 : i32
    %c0_i32_0 = arith.constant 0 : i32
    %c0_i32_1 = arith.constant 0 : i32
    return %c0_i32, %c0_i32_0 : i32, i32
  }
  func.func @transform_8(%arg0: i32) -> (i32, i32) {
    %c0_i32 = arith.constant 0 : i32
    %c0_i32_0 = arith.constant 0 : i32
    %c0_i32_1 = arith.constant 0 : i32
    return %c0_i32, %c0_i32_0 : i32, i32
  }
  func.func @transform_9(%arg0: i32) -> (i32, i32) {
    %c0_i32 = arith.constant 0 : i32
    %c0_i32_0 = arith.constant 0 : i32
    %c0_i32_1 = arith.constant 0 : i32
    return %c0_i32, %c0_i32_0 : i32, i32
  }
  func.func @transform_10(%arg0: i32) -> (i32, i32) {
    %c0_i32 = arith.constant 0 : i32
    %c0_i32_0 = arith.constant 0 : i32
    %c0_i32_1 = arith.constant 0 : i32
    return %c0_i32, %c0_i32_0 : i32, i32
  }
  func.func @transform_11(%arg0: i32) -> (i32, i32) {
    %c0_i32 = arith.constant 0 : i32
    %c0_i32_0 = arith.constant 0 : i32
    %c0_i32_1 = arith.constant 0 : i32
    return %c0_i32, %c0_i32_0 : i32, i32
  }
  func.func @transform_12(%arg0: i32) -> (i32, i32) {
    %c0_i32 = arith.constant 0 : i32
    %c0_i32_0 = arith.constant 0 : i32
    %c0_i32_1 = arith.constant 0 : i32
    return %c0_i32, %c0_i32_0 : i32, i32
  }
  func.func @transform_13(%arg0: i32) -> (i32, i32) {
    %c0_i32 = arith.constant 0 : i32
    %c0_i32_0 = arith.constant 0 : i32
    %c0_i32_1 = arith.constant 0 : i32
    return %c0_i32, %c0_i32_0 : i32, i32
  }
  func.func @transform_14(%arg0: i32) -> (i32, i32) {
    %c0_i32 = arith.constant 0 : i32
    %c0_i32_0 = arith.constant 0 : i32
    %c0_i32_1 = arith.constant 0 : i32
    return %c0_i32, %c0_i32_0 : i32, i32
  }
  func.func @transform_15(%arg0: i32) -> (i32, i32) {
    %c0_i32 = arith.constant 0 : i32
    %c0_i32_0 = arith.constant 0 : i32
    %c0_i32_1 = arith.constant 0 : i32
    return %c0_i32, %c0_i32_0 : i32, i32
  }
  func.func @transform_16(%arg0: i32) -> (i32, i32) {
    %c0_i32 = arith.constant 0 : i32
    %c0_i32_0 = arith.constant 0 : i32
    %c0_i32_1 = arith.constant 0 : i32
    return %c0_i32, %c0_i32_0 : i32, i32
  }
}

</mosaic_0001>

<bundles_post_ra>
// kernel: psgn_forward.1
= control target key start
LH: loop header
LB: loop body
LE: loop exit
PB: predicated region body
PF: predicated region fallthrough
CT: control target
= control target key end

     0   :  { %vm105_vm0 = vcmask 1041408   ;;  %vm95_vm1 = vcmask 293888   ;;  %vm170_vm2 = vcmask 1042432   ;;  %vm166_vm3 = vcmask 441344   ;;  %s1517_s0 = inlined_call_operand.vmem [shape: bf16[36,54], index: 0, kind: input, shape index: {}]   ;;  %s1518_s1 = inlined_call_operand.vmem [shape: bf16[48,36], index: 1, kind: input, shape index: {}]   ;;  %s1519_s2 = inlined_call_operand.vmem [shape: bf16[3,54,64], index: 2, kind: input, shape index: {}]   ;;  %s1520_s3 = inlined_call_operand.vmem [shape: f32[1,64], index: 3, kind: input, shape index: {}]   ;;  %s1521_s5 = inlined_call_operand.vmem [shape: bf16[3,64,64], index: 5, kind: input, shape index: {}]   ;;  %s1522_s4 = inlined_call_operand.vmem [shape: bf16[24,16], index: 4, kind: input, shape index: {}]   ;;  %s1523_s6 = inlined_call_operand.vmem [shape: f32[1,64], index: 6, kind: input, shape index: {}]   ;;  %s1524_s8 = inlined_call_operand.vmem [shape: bf16[64,32], index: 8, kind: input, shape index: {}]   ;;  %s1525_s7 = inlined_call_operand.vmem [shape: bf16[2,8], index: 7, kind: input, shape index: {}]   ;;  %s1526_s9 = inlined_call_operand.vmem [shape: f32[1,32], index: 9, kind: input, shape index: {}]   ;;  %s1527_s10 = inlined_call_operand.vmem [shape: bf16[32,128], index: 10, kind: input, shape index: {}]   ;;  %s1528_s11 = inlined_call_operand.vmem [shape: f32[1,128], index: 11, kind: input, shape index: {}]   ;;  %s1529_s12 = inlined_call_operand.vmem [shape: bf16[128,128], index: 12, kind: input, shape index: {}]   ;;  %s1530_s13 = inlined_call_operand.vmem [shape: f32[1,128], index: 13, kind: input, shape index: {}]   ;;  %s1531_s14 = inlined_call_operand.vmem [shape: bf16[128,192], index: 14, kind: input, shape index: {}]   ;;  %s1532_s15 = inlined_call_operand.vmem [shape: f32[1,192], index: 15, kind: input, shape index: {}]   ;;  %s1533_s16 = inlined_call_operand.vmem [shape: f32[2,192], index: 16, kind: output, shape index: {}]  }
   0x1   :  { %1535 = sst [smem:[#allocation2_spill]] %s1517_s0  ;;  %v1104_v6 = vld [vmem:[%s1518_s1] sm:$0xff]  ;;  %v144_v7 = vld [vmem:[%s1519_s2 + $0x18] sm:$0x7]  ;;  %v1105_v11 = vld [vmem:[%s1518_s1 + $0x8] sm:$0xff]  ;;  %vm308_vm4 = vcmask 130048  }
   0x2   :  { %s1536_s23 = sld [smem:[#allocation2_spill]]  ;;  %v158_v8 = vunpack.c.l.b16 %v144_v7  ;;  %v1106_v12 = vld [vmem:[%s1518_s1 + $0x10] sm:$0xff]  ;;  %v1108_v14 = vld [vmem:[%s1519_s2 + $0x8] sm:$0xff]  ;;  %v1107_v15 = vld [vmem:[%s1519_s2] sm:$0xff]  ;;  %vm370_vm5 = vcmask 523264   ;;  %vm497_vm6 = vcmask 1043456  }
   0x3   :  { %v1109_v13 = vld [vmem:[%s1519_s2 + $0x10] sm:$0xff]  ;;  %v1111_v21 = vld [vmem:[%s1519_s2 + $0x24] sm:$0xff]  ;;  %v1110_v22 = vld [vmem:[%s1519_s2 + $0x1c] sm:$0xff]  ;;  %vm493_vm7 = vcmask 64512   ;;  %vm588_vm8 = vcmask 261120   ;;  %vm823_vm9 = vcmask 519170  }
   0x4   :  { %v162_v9 = vpack.c.b16 %v158_v8, %v158_v8  ;;  %v872_v16 = vld [vmem:[%s1519_s2 + $0x34] sm:$0x7]  ;;  %v1112_v20 = vld [vmem:[%s1519_s2 + $0x2c] sm:$0xff]  ;;  %v1114_v29 = vld [vmem:[%s1519_s2 + $0x40] sm:$0xff] }
   0x5   :  { %v212_v17 = vunpack.c.l.b16 %v872_v16  ;;  %v892_v23 = vld [vmem:[%s1519_s2 + $0x50] sm:$0x7]  ;;  %v1115_v27 = vld [vmem:[%s1519_s2 + $0x48] sm:$0xff]  ;;  %v1113_v30 = vld [vmem:[%s1519_s2 + $0x38] sm:$0xff] }
   0x6   :  { %v172_v10 = vsel %vm170_vm2, %v162_v9, 0  ;;  %v264_v24 = vunpack.c.l.b16 %v892_v23  ;;  %v1159_v41 = vld [vmem:[%s1520_s3] ss:$0 sm:$0xff]  ;;  %v1120_v44 = vld [vmem:[%s1521_s5 + $0x18] sm:$0xff]  ;;  %v1119_v48 = vld [vmem:[%s1521_s5 + $0x10] sm:$0xff] }
   0x7   :  { %178 = vmatpush.bf16.msra.mxu1 %v172_v10  ;;  %v216_v18 = vpack.c.b16 %v212_v17, %v212_v17  ;;  %v1124_v46 = vld [vmem:[%s1521_s5 + $0x38] sm:$0xff]  ;;  %v1118_v54 = vld [vmem:[%s1521_s5 + $0x8] sm:$0xff]  ;;  %v1116_v59 = vld [vmem:[%s1522_s4] sm:$0xff] }
   0x8   :  { %v58_v0 = vld [vmem:[%s1536_s23 + $0x10] sm:$0x3]  ;;  %v1103_v4 = vld [vmem:[%s1536_s23 + $0x8] sm:$0xff]  ;;  %v1102_v5 = vld [vmem:[%s1536_s23] sm:$0xff]  ;;  %v268_v25 = vpack.c.b16 %v264_v24, %v264_v24 }
   0x9   :  { %v89_v1 = vunpack.c.l.b16 %v58_v0  ;;  %v224_v19 = vsel %vm170_vm2, %v216_v18, 0  ;;  %v298_v60 = vld [vmem:[%s1522_s4 + $0x8] sm:$0xf]  ;;  %v1117_v63 = vld [vmem:[%s1521_s5] sm:$0xff]  ;;  %v1123_v0 = vld [vmem:[%s1521_s5 + $0x30] sm:$0xff] }
   0xa   :  { %230 = vmatpush.bf16.msra.mxu2 %v224_v19  ;;  %v276_v26 = vsel %vm170_vm2, %v268_v25, 0  ;;  %v305_v61 = vunpack.c.l.b16 %v298_v60  ;;  %v1130_v17 = vld [vmem:[%s1524_s8 + $0x8] sm:$0xff]  ;;  %vm824_vm10 = vmor %vm823_vm9, %vm105_vm0 }
   0xb   :  { %v92_v2 = vpack.c.b16 %v89_v1, %v89_v1  ;;  %179 = vmatpush.bf16.msra.mxu1 %v1109_v13  ;;  %282 = vmatpush.bf16.msra.mxu3 %v276_v26  ;;  %v1122_v1 = vld [vmem:[%s1521_s5 + $0x28] sm:$0xff] }
   0xc   :  { %v307_v62 = vpack.c.b16 %v305_v61, %v305_v61 }
   0xd   :  { %v107_v3 = vsel %vm105_vm0, %v92_v2, 0  ;;  %v1128_v2 = vld [vmem:[%s1521_s5 + $0x58] sm:$0xff] }
   0xe   :  { %114 = vmatpush.bf16.msra.mxu0 %v107_v3  ;;  %231 = vmatpush.bf16.msra.mxu2 %v1112_v20  ;;  %v1121_v3 = vld [vmem:[%s1521_s5 + $0x20] sm:$0xff] }
   0xf   :  { %180 = vmatpush.bf16.msra.mxu1 %v1108_v14  ;;  %283 = vmatpush.bf16.msra.mxu3 %v1115_v27  ;;  %v1132_v14 = vld [vmem:[%s1524_s8 + $0x18] sm:$0xff]  ;;  %v1160_v20 = vld [vmem:[%s1523_s6] ss:$0 sm:$0xff] }
  0x12   :  { %115 = vmatpush.bf16.msra.mxu0 %v1103_v4  ;;  %232 = vmatpush.bf16.msra.mxu2 %v1111_v21  ;;  %v1127_v4 = vld [vmem:[%s1521_s5 + $0x50] sm:$0xff] }
  0x13   :  { %181 = vmatpush.bf16.msra.mxu1 %v1107_v15  ;;  %284 = vmatpush.bf16.msra.mxu3 %v1114_v29  ;;  %v1131_v15 = vld [vmem:[%s1524_s8 + $0x10] sm:$0xff] }
  0x16   :  { %116 = vmatpush.bf16.msra.mxu0 %v1102_v5  ;;  %233 = vmatpush.bf16.msra.mxu2 %v1110_v22  ;;  %v1126_v5 = vld [vmem:[%s1521_s5 + $0x48] sm:$0xff] }
  0x17   :  { %285 = vmatpush.bf16.msra.mxu3 %v1113_v30  ;;  %v491_v30 = vld [vmem:[%s1525_s7] sm:$0x1] }
  0x19   :  { %850 = vmatmul.msk.bf16.vlgmr.msra.gmra.mxu0 %vm95_vm1, %v1104_v6  ;;  %v1125_v6 = vld [vmem:[%s1521_s5 + $0x40] sm:$0xff] }
  0x1a   :  { %378 = vmatpush.bf16.msrb.mxu2 %v1120_v44 }
  0x1b   :  { %429 = vmatpush.bf16.msrb.mxu3 %v1124_v46 }
  0x1e   :  { %379 = vmatpush.bf16.msrb.mxu2 %v1119_v48  ;;  %v1136_v48 = vld [vmem:[%s1529_s12 + $0x8] sm:$0xff] }
  0x1f   :  { %430 = vmatpush.bf16.msrb.mxu3 %v1123_v0  ;;  %v1080_v0 = vld [vmem:[%s1531_s14 + $0x50] sm:$0xf] }
  0x22   :  { %380 = vmatpush.bf16.msrb.mxu2 %v1118_v54  ;;  %v1158_v54 = vld [vmem:[%s1531_s14 + $0x74] sm:$0xf0] }
  0x23   :  { %431 = vmatpush.bf16.msrb.mxu3 %v1122_v1  ;;  %v1154_v1 = vld [vmem:[%s1531_s14 + $0x54] sm:$0xf0] }
  0x26   :  { %381 = vmatpush.bf16.msrb.mxu2 %v1117_v63  ;;  %v1082_v63 = vld [vmem:[%s1531_s14 + $0x58] sm:$0xf0] }
  0x27   :  { %432 = vmatpush.bf16.msrb.mxu3 %v1121_v3  ;;  %v1081_v3 = vor.u32 %v1154_v1, %v1080_v0 }
  0x29   :  { %851 = vmatmul.msk.bf16.gmra.mxu0 %vm95_vm1, %v1105_v11 }
  0x39   :  { %852 = vmatmul.msk.bf16.gmra.mxu0 %vm95_vm1, %v1106_v12 }
  0x96   :  { %v118_v28 = vpop.f32.mrf.mxu0 }
  0x9e   :  { %v120_v31 = vpop.f32.mrf.mxu0 }
  0x9f   :  { %v137_v32 = vpack.c.bf16 %v120_v31, %v118_v28  ;;  %v1129_v31 = vld [vmem:[%s1524_s8] sm:$0xff] }
  0xa1   :  { %865 = vmatmul.msk.bf16.vlgmr.msra.gmra.mxu1 %vm166_vm3, %v137_v32  ;;  %v1134_v32 = vld [vmem:[%s1527_s10 + $0x8] sm:$0xff] }
  0xa6   :  { %v123_v33 = vpop.f32.mrf.mxu0 }
  0xae   :  { %v125_v34 = vpop.f32.mrf.mxu0 }
  0xaf   :  { %v190_v35 = vpack.c.bf16 %v125_v34, %v123_v33 }
  0xb1   :  { %885 = vmatmul.msk.bf16.vlgmr.msra.gmra.mxu2 %vm166_vm3, %v190_v35 }
  0xb2   :  { %480 = vmatpush.bf16.msra.mxu2 %v1128_v2 }
  0xb6   :  { %v128_v36 = vpop.f32.mrf.mxu0  ;;  %481 = vmatpush.bf16.msra.mxu2 %v1127_v4  ;;  %v1151_v4 = vld [vmem:[%s1531_s14 + $0x44] sm:$0xf] }
  0xba   :  { %482 = vmatpush.bf16.msra.mxu2 %v1126_v5  ;;  %v1074_v5 = vld [vmem:[%s1531_s14 + $0x48] sm:$0xf0] }
  0xbe   :  { %v130_v37 = vpop.f32.mrf.mxu0  ;;  %483 = vmatpush.bf16.msra.mxu2 %v1125_v6  ;;  %v1072_v6 = vld [vmem:[%s1531_s14 + $0x40] sm:$0xf] }
  0xbf   :  { %v242_v38 = vpack.c.bf16 %v130_v37, %v128_v36  ;;  %v1133_v36 = vld [vmem:[%s1527_s10] sm:$0xff]  ;;  %v1142_v37 = vld [vmem:[%s1529_s12 + $0x38] sm:$0xff] }
  0xc1   :  { %905 = vmatmul.msk.bf16.vlgmr.msra.gmra.mxu3 %vm166_vm3, %v242_v38  ;;  %v1141_v38 = vld [vmem:[%s1529_s12 + $0x30] sm:$0xff] }
 0x11e   :  { %v183_v39 = vpop.f32.mrf.mxu1 }
 0x11f   :  { %v188_v45 = vadd.f32 %v1159_v41, %v183_v39  ;;  %v1140_v39 = vld [vmem:[%s1529_s12 + $0x28] sm:$0xff] }
 0x126   :  { %v185_v43 = vpop.f32.mrf.mxu1 }
 0x127   :  { %v189_v49 = vadd.f32 %v1159_v41, %v185_v43  ;;  %v1138_v41 = vld [vmem:[%s1529_s12 + $0x18] sm:$0xff]  ;;  %v1161_v43 = vld [vmem:[%s1526_s9] ss:$0 sm:$0xff] }
 0x134   :  { %v235_v40 = vpop.f32.mrf.mxu2 }
 0x135   :  { %v240_v50 = vadd.f32 %v235_v40, %v188_v45  ;;  %v1139_v40 = vld [vmem:[%s1529_s12 + $0x20] sm:$0xff] }
 0x13c   :  { %v237_v47 = vpop.f32.mrf.mxu2 }
 0x13d   :  { %v241_v51 = vadd.f32 %v237_v47, %v189_v49  ;;  %v1135_v49 = vld [vmem:[%s1529_s12] sm:$0xff] }
 0x144   :  { %v287_v42 = vpop.f32.mrf.mxu3 }
 0x145   :  { %v292_v52 = vadd.f32 %v287_v42, %v240_v50  ;;  %v1137_v42 = vld [vmem:[%s1529_s12 + $0x10] sm:$0xff] }
 0x146   :  { %v1157_v50 = vld [vmem:[%s1531_s14 + $0x74] sm:$0xf] }
 0x147   :  { %v294_v56 = vmax.f32 %v292_v52, 0.0  ;;  %v1096_v52 = vld [vmem:[%s1531_s14 + $0x70] sm:$0xf] }
 0x14c   :  { %v289_v53 = vpop.f32.mrf.mxu3 }
 0x14d   :  { %v293_v55 = vadd.f32 %v289_v53, %v241_v51  ;;  %v1098_v51 = vld [vmem:[%s1531_s14 + $0x78] sm:$0xf0] }
 0x14e   :  { %v1101_v53 = vor.u32 %v1157_v50, %v1098_v51 }
 0x14f   :  { %v295_v57 = vmax.f32 %v293_v55, 0.0  ;;  %v1155_v55 = vld [vmem:[%s1531_s14 + $0x64] sm:$0xf] }
 0x150   :  { %805 = vmatpush.bf16.msrb.mxu0 %v1101_v53 }
 0x151   :  { %v299_v58 = vpack.c.bf16 %v295_v57, %v294_v56  ;;  %v1090_v56 = vld [vmem:[%s1531_s14 + $0x68] sm:$0xf0]  ;;  %v1097_v57 = vor.u32 %v1158_v54, %v1096_v52 }
 0x152   :  { %v1093_v60 = vor.u32 %v1155_v55, %v1090_v56 }
 0x153   :  { %322 = vmatpush.bf16.msrb.mxu1 %v299_v58  ;;  %v1088_v58 = vld [vmem:[%s1531_s14 + $0x60] sm:$0xf] }
 0x154   :  { %806 = vmatpush.bf16.msrb.mxu0 %v1093_v60 }
 0x156   :  { %910 = vmatmul.msk.bf16.vlgmr.msrb.gmra.mxu1 %vm308_vm4, %v1116_v59  ;;  %v1156_v59 = vld [vmem:[%s1531_s14 + $0x64] sm:$0xf0] }
 0x157   :  { %558 = vmatpush.bf16.msra.mxu1 %v1132_v14  ;;  %v1089_v61 = vor.u32 %v1156_v59, %v1088_v58 }
 0x15b   :  { %559 = vmatpush.bf16.msra.mxu1 %v1131_v15 }
 0x15f   :  { %560 = vmatpush.bf16.msra.mxu1 %v1130_v17  ;;  %v1058_v17 = vld [vmem:[%s1531_s14 + $0x28] sm:$0xf0] }
 0x163   :  { %561 = vmatpush.bf16.msra.mxu1 %v1129_v31 }
 0x166   :  { %911 = vmatmul.msk.bf16.gmra.mxu1 %vm308_vm4, %v307_v62  ;;  %v1153_v62 = vld [vmem:[%s1531_s14 + $0x54] sm:$0xf] }
 0x167   :  { %598 = vmatpush.bf16.msrb.mxu1 %v1134_v32  ;;  %v1085_v2 = vor.u32 %v1153_v62, %v1082_v63  ;;  %v1050_v32 = vld [vmem:[%s1531_s14 + $0x18] sm:$0xf0] }
 0x169   :  { %807 = vmatpush.bf16.msrb.mxu0 %v1085_v2 }
 0x16b   :  { %599 = vmatpush.bf16.msrb.mxu1 %v1133_v36  ;;  %v1143_v36 = vld [vmem:[%s1531_s14 + $0x4] sm:$0xf] }
 0x1d3   :  { %v324_v7 = vpop.f32.mrf.mxu1 }
 0x1d4   :  { %v337_v8 = vpack.c.bf16 %v324_v7, %v324_v7  ;;  %v1152_v7 = vld [vmem:[%s1531_s14 + $0x44] sm:$0xf0] }
 0x1d6   :  { %928 = vmatmul.msk.bf16.vlgmr.msrb.gmra.mxu2 %vm370_vm5, %v337_v8  ;;  %v1077_v8 = vor.u32 %v1151_v4, %v1074_v5 }
 0x1d7   :  { %675 = vmatpush.bf16.msrb.mxu2 %v1142_v37 }
 0x1d8   :  { %808 = vmatpush.bf16.msrb.mxu0 %v1077_v8 }
 0x1db   :  { %v326_v9 = vpop.f32.mrf.mxu1  ;;  %676 = vmatpush.bf16.msrb.mxu2 %v1141_v38  ;;  %v1042_v38 = vld [vmem:[%s1531_s14 + $0x8] sm:$0xf0] }
 0x1dc   :  { %v388_v10 = vpack.c.bf16 %v326_v9, %v326_v9  ;;  %v1073_v9 = vor.u32 %v1152_v7, %v1072_v6 }
 0x1de   :  { %953 = vmatmul.msk.bf16.vlgmr.msrb.gmra.mxu3 %vm370_vm5, %v388_v10  ;;  %v1149_v10 = vld [vmem:[%s1531_s14 + $0x34] sm:$0xf] }
 0x1df   :  { %677 = vmatpush.bf16.msrb.mxu2 %v1140_v39  ;;  %v1045_v39 = vor.u32 %v1143_v36, %v1042_v38 }
 0x1e3   :  { %v329_v11 = vpop.f32.mrf.mxu1  ;;  %678 = vmatpush.bf16.msrb.mxu2 %v1139_v40  ;;  %v1163_v40 = vld [vmem:[%s1530_s13] ss:$0 sm:$0xff] }
 0x1e4   :  { %v439_v12 = vpack.c.bf16 %v329_v11, %v329_v11  ;;  %v1066_v11 = vld [vmem:[%s1531_s14 + $0x38] sm:$0xf0] }
 0x1e5   :  { %v1069_v14 = vor.u32 %v1149_v10, %v1066_v11 }
 0x1e6   :  { %978 = vmatmul.msk.bf16.vlgmr.msra.gmra.mxu2 %vm370_vm5, %v439_v12  ;;  %v1064_v12 = vld [vmem:[%s1531_s14 + $0x30] sm:$0xf] }
 0x1e7   :  { %679 = vmatpush.bf16.msrb.mxu2 %v1138_v41  ;;  %809 = vmatpush.bf16.msrb.mxu0 %v1069_v14 }
 0x1eb   :  { %v331_v13 = vpop.f32.mrf.mxu1  ;;  %680 = vmatpush.bf16.msrb.mxu2 %v1137_v42 }
 0x1ec   :  { %v1150_v13 = vld [vmem:[%s1531_s14 + $0x34] sm:$0xf0] }
 0x1ed   :  { %v1065_v15 = vor.u32 %v1150_v13, %v1064_v12 }
 0x1ef   :  { %681 = vmatpush.bf16.msrb.mxu2 %v1136_v48 }
 0x1f3   :  { %682 = vmatpush.bf16.msrb.mxu2 %v1135_v49 }
 0x259   :  { %v383_v16 = vpop.f32.mrf.mxu2 }
 0x25a   :  { %v387_v21 = vadd.f32 %v1160_v20, %v383_v16  ;;  %v1147_v16 = vld [vmem:[%s1531_s14 + $0x24] sm:$0xf] }
 0x25b   :  { %v1061_v20 = vor.u32 %v1147_v16, %v1058_v17 }
 0x25d   :  { %810 = vmatpush.bf16.msrb.mxu0 %v1061_v20 }
 0x261   :  { %v385_v18 = vpop.f32.mrf.mxu2  ;;  %v434_v19 = vpop.f32.mrf.mxu3 }
 0x262   :  { %v438_v22 = vadd.f32 %v434_v19, %v387_v21  ;;  %v1056_v18 = vld [vmem:[%s1531_s14 + $0x20] sm:$0xf]  ;;  %v1148_v19 = vld [vmem:[%s1531_s14 + $0x24] sm:$0xf0] }
 0x263   :  { %v1057_v21 = vor.u32 %v1148_v19, %v1056_v18 }
 0x269   :  { %v436_v23 = vpop.f32.mrf.mxu3  ;;  %v485_v24 = vpop.f32.mrf.mxu2 }
 0x26a   :  { %v489_v25 = vadd.f32 %v485_v24, %v438_v22  ;;  %v1162_v22 = vld [vmem:[%s1528_s11] ss:$0 sm:$0xff] }
 0x26c   :  { %v490_v26 = vmax.f32 %v489_v25, 0.0 }
 0x26e   :  { %v492_v27 = vpack.c.bf16 %v490_v26, %v490_v26 }
 0x270   :  { %v499_v28 = vsel %vm497_vm6, %v492_v27, 0 }
 0x271   :  { %v487_v29 = vpop.f32.mrf.mxu2  ;;  %508 = vmatpush.bf16.msra.mxu3 %v499_v28  ;;  %v1048_v28 = vld [vmem:[%s1531_s14 + $0x10] sm:$0xf] }
 0x272   :  { %v1146_v29 = vld [vmem:[%s1531_s14 + $0x14] sm:$0xf0] }
 0x273   :  { %v1049_v31 = vor.u32 %v1146_v29, %v1048_v28 }
 0x274   :  { %979 = vmatmul.msk.bf16.vlgmr.msra.gmra.mxu3 %vm493_vm7, %v491_v30  ;;  %v1145_v30 = vld [vmem:[%s1531_s14 + $0x14] sm:$0xf] }
 0x275   :  { %792 = vmatpush.bf16.msrb.mxu3 %v1097_v57 }
 0x279   :  { %793 = vmatpush.bf16.msrb.mxu3 %v1089_v61 }
 0x27d   :  { %794 = vmatpush.bf16.msrb.mxu3 %v1081_v3 }
 0x281   :  { %795 = vmatpush.bf16.msrb.mxu3 %v1073_v9 }
 0x285   :  { %796 = vmatpush.bf16.msrb.mxu3 %v1065_v15 }
 0x289   :  { %797 = vmatpush.bf16.msrb.mxu3 %v1057_v21 }
 0x28d   :  { %798 = vmatpush.bf16.msrb.mxu3 %v1049_v31 }
 0x2f7   :  { %v510_v33 = vpop.f32.mrf.mxu3 }
 0x2f8   :  { %v514_v34 = vpack.c.bf16 %v510_v33, %v510_v33  ;;  %v1053_v33 = vor.u32 %v1145_v30, %v1050_v32 }
 0x2fa   :  { %996 = vmatmul.msk.bf16.vlgmr.msra.gmra.mxu1 %vm370_vm5, %v514_v34  ;;  %811 = vmatpush.bf16.msrb.mxu0 %v1053_v33  ;;  %v1040_v34 = vld [vmem:[%s1531_s14] sm:$0xf] }
 0x2fe   :  { %812 = vmatpush.bf16.msrb.mxu0 %v1045_v39 }
 0x2ff   :  { %v512_v35 = vpop.f32.mrf.mxu3 }
 0x300   :  { %v1144_v35 = vld [vmem:[%s1531_s14 + $0x4] sm:$0xf0] }
 0x301   :  { %v1041_v37 = vor.u32 %v1144_v35, %v1040_v34 }
 0x303   :  { %799 = vmatpush.bf16.msrb.mxu3 %v1041_v37 }
 0x377   :  { %v563_v44 = vpop.f32.mrf.mxu1 }
 0x378   :  { %v564_v45 = vadd.f32 %v1161_v43, %v563_v44 }
 0x37a   :  { %v567_v46 = vpack.c.bf16 %v564_v45, %v564_v45 }
 0x37c   :  { %1005 = vmatmul.msk.bf16.vlgmr.msrb.gmra.mxu1 %vm588_vm8, %v567_v46  ;;  %v706_v46 = vld [vmem:[%s1532_s15] sm:$0x3] }
 0x37d   :  { %v708_v50 = vperm.slane %v706_v46, 0 }
 0x37f   :  { %v565_v47 = vpop.f32.mrf.mxu1 }
 0x380   :  { %v709_v47 = vperm.slane %v706_v46, 1 }
 0x3f9   :  { %v601_v23 = vpop.f32.mrf.mxu1 }
 0x3fa   :  { %v602_v24 = vadd.f32 %v1162_v22, %v601_v23 }
 0x3fc   :  { %v605_v25 = vmax.f32 %v602_v24, 0.0 }
 0x3fe   :  { %v606_v26 = vpack.c.bf16 %v605_v25, %v605_v25 }
 0x400   :  { %683 = vmatmul.bf16.vlgmr.msrb.gmra.mxu2 %v606_v26 }
 0x401   :  { %v603_v27 = vpop.f32.mrf.mxu1 }
 0x483   :  { %v684_v41 = vpop.f32.mrf.mxu2 }
 0x484   :  { %v685_v42 = vadd.f32 %v1163_v40, %v684_v41 }
 0x486   :  { %v688_v43 = vmax.f32 %v685_v42, 0.0 }
 0x488   :  { %v689_v44 = vpack.c.bf16 %v688_v43, %v688_v43 }
 0x48a   :  { %800 = vmatmul.bf16.vlgmr.msrb.gmra.mxu3 %v689_v44  ;;  %813 = vmatmul.bf16.vlgmr.msrb.gmra.mxu0 %v689_v44 }
 0x48b   :  { %v686_v45 = vpop.f32.mrf.mxu2 }
 0x507   :  { %v814_v48 = vpop.f32.mrf.mxu0 }
 0x508   :  { %v815_v49 = vadd.f32 %v814_v48, %v709_v47 }
 0x50a   :  { %v820_v52 = vrot.slane %v815_v49, 6 }
 0x50d   :  { %v801_v51 = vpop.f32.mrf.mxu3 }
 0x50e   :  { %v802_v53 = vadd.f32 %v801_v51, %v708_v50 }
 0x50f   :  { %v816_v54 = vpop.f32.mrf.mxu0 }
 0x510   :  { %v821_v55 = vsel %vm105_vm0, %v802_v53, %v820_v52 }
 0x511   :  { %825 = vst.msk [vmem:[%s1533_s16] sm:$0xf] %vm824_vm10, %v821_v55 }
 0x515   :  { %v803_v56 = vpop.f32.mrf.mxu3 }

</bundles_post_ra>
